<compile_context>
chip_gen: v6e
topology: v6e:2x2x1
jax: 0.10.0
libtpu: 0.0.40
codegen_flags: <defaults>
</compile_context>

<pallas_src>
import jax
import jax.numpy as jnp
from jax.experimental import pallas as pl
from jax.experimental.pallas import tpu as pltpu

# --- static config (mirrors the `op.*` constants used by the original module) ---
B = 2
H = 32               # hidden_size
V = 64               # n_vocab
N_TOPIC = 16
CONTEXT_MAX_LEN = 16  # op.context_max_len
STATE_NUM = 8         # op.state_num_redial
ACTION_NUM = 8        # op.action_num
R_MAX_LEN = 8         # response (teacher-forcing) length
L_SRC = CONTEXT_MAX_LEN + STATE_NUM + ACTION_NUM
SCALE_PRJ = True      # op.scale_prj
BOS_IDX, EOS_IDX = 1, 2
NEG_BIG = -1e9


# ------------------------------- Pallas kernel -------------------------------
def _proj_kernel(dec_ref, srch_ref, maskbias_ref, idx_ref, wgen_ref, bgen_ref, out_ref):
    nb, l_r, h = dec_ref.shape
    l_s = srch_ref.shape[1]
    vpad = wgen_ref.shape[1]

    scale = h ** (-0.5) if SCALE_PRJ else 1.0

    dec = dec_ref[...] * scale                 # (B, L_r, H)  scale folded in once
    srch = srch_ref[...]                       # (B, L_s, H)

    # generation logits: one flattened (B*L_r, H) x (H, Vpad) MXU matmul.
    # bgen is pre-scaled and its padded columns hold -1e9*scale -> masked out.
    gen_logit = jnp.dot(dec.reshape(nb * l_r, h), wgen_ref[...],
                        preferred_element_type=jnp.float32
                        ).reshape(nb, l_r, vpad) + bgen_ref[...]          # (B, L_r, Vpad)

    # copy logits: batched contraction over H (no in-kernel transpose).
    # mask bias is additive (0 valid, -1e9*scale padded); masked lanes end up at
    # scaled_dot - 1e9*scale instead of exactly -1e9*scale as in masked_fill —
    # identical after exp (underflows to 0).
    copy_logit = jnp.einsum('blh,bsh->bls', dec, srch,
                            preferred_element_type=jnp.float32) + maskbias_ref[...]

    # joint softmax over concat([gen_logit, copy_logit], -1) without the concat
    m = jnp.maximum(gen_logit.max(axis=-1, keepdims=True),
                    copy_logit.max(axis=-1, keepdims=True))               # (B, L_r, 1)
    e_gen = jnp.exp(gen_logit - m)
    e_copy = jnp.exp(copy_logit - m)
    inv = pl.reciprocal(e_gen.sum(axis=-1, keepdims=True)
                        + e_copy.sum(axis=-1, keepdims=True), approx=True)

    # scatter_add of copy probabilities onto the vocabulary == batched matmul with
    # an in-kernel one-hot built from int32 indices (no HBM one-hot traffic).
    onehot = (jax.lax.broadcasted_iota(jnp.int32, (nb, l_s, vpad), 2)
              == idx_ref[...]).astype(jnp.float32)                        # (B, L_s, Vpad)
    out_ref[...] = e_gen * inv + jnp.einsum('bls,bsv->blv', e_copy * inv, onehot,
                                            preferred_element_type=jnp.float32)


def prepare_proj_params(w_gen, b_gen, scale_prj=SCALE_PRJ):
    """Pad vocab (lane) dim to a multiple of 128 and fold the prj scale into the
    bias — done ONCE at parameter-init time, not per call."""
    h, v = w_gen.shape
    vpad = max(128, pl.cdiv(v, 128) * 128)
    scale = h ** (-0.5) if scale_prj else 1.0
    w_gen_p = jnp.pad(w_gen, ((0, 0), (0, vpad - v)))                     # zero cols
    b_gen_p = jnp.pad(b_gen, ((0, 0), (0, vpad - v)),
                      constant_values=NEG_BIG) * scale                    # -1e9*scale pads
    return w_gen_p, b_gen_p


def response_proj(dec_out, src_hidden, src_mask, copy_idx, w_gen_p, b_gen_p):
    bb, l_r, h = dec_out.shape
    l_s = src_hidden.shape[1]
    vpad = w_gen_p.shape[1]
    scale = h ** (-0.5) if SCALE_PRJ else 1.0

    # additive mask bias: 0 where valid, -1e9*scale where padded  (B, 1, L_s)
    mask_bias = (src_mask - 1.0) * (1e9 * scale)
    idx3 = copy_idx.astype(jnp.int32)[..., None]                          # (B, L_s, 1)

    vmem = pl.BlockSpec(memory_space=pltpu.MemorySpace.VMEM)
    flops = 2 * bb * l_r * (h * vpad + h * l_s + l_s * vpad)
    bytes_accessed = 4 * (dec_out.size + src_hidden.size + mask_bias.size
                          + idx3.size + w_gen_p.size + b_gen_p.size
                          + bb * l_r * vpad)
    out = pl.pallas_call(
        _proj_kernel,
        out_shape=jax.ShapeDtypeStruct((bb, l_r, vpad), jnp.float32),
        in_specs=[vmem] * 6,
        out_specs=vmem,
        cost_estimate=pl.CostEstimate(flops=flops,
                                      transcendentals=bb * l_r * (vpad + l_s + 1),
                                      bytes_accessed=bytes_accessed),
    )(dec_out, src_hidden, mask_bias, idx3, w_gen_p, b_gen_p)
    # (B, L_r, Vpad); columns >= V are exactly 0 — consumers may read it padded
    # (lane-dense) or slice [..., :V] downstream.
    return out


# ------------------------------ plain-JAX glue --------------------------------
def get_mask_via_len(lengths, max_len):
    # Tools.get_mask_via_len -> (B, 1, max_len), 1.0 where position < length
    pos = jnp.arange(max_len)[None, :]
    return (pos < lengths[:, None]).astype(jnp.float32)[:, None, :]


def main_encoder_standin(context, context_mask, e_tok, w_enc):
    # TODO(synk): the real main_encoder is an external transformer injected into
    # Response.__init__; deterministic embedding + linear stand-in used here.
    emb = e_tok[context]                                  # (B, Lc, H)
    h = jnp.tanh(emb @ w_enc)
    return h * context_mask[:, 0, :, None]


def decoder_standin(resp_gth, src_hidden, src_mask, e_tok, w_dec):
    # TODO(synk): the real decoder is an external transformer decoder (with
    # subsequent-mask self-attention); stand-in = target embedding + masked mean
    # of source hidden, projected.
    emb = e_tok[resp_gth]                                 # (B, L_r, H)
    m = src_mask[:, 0, :, None]                           # (B, L_s, 1)
    pooled = (src_hidden * m).sum(1) / jnp.maximum(m.sum(1), 1.0)   # (B, H)
    return jnp.tanh((emb + pooled[:, None, :]) @ w_dec)


def response_forward(params, ar, ar_len, context, context_len, tp_path, tp_path_len,
                     tp_hidden, action_hidden, resp_gth, resp_gth_len):
    context_mask = get_mask_via_len(context_len, CONTEXT_MAX_LEN)        # (B,1,Lc)
    context_hidden = main_encoder_standin(context, context_mask,
                                          params["E_tok"], params["W_enc"])
    tp_mask = get_mask_via_len(tp_path_len, STATE_NUM)                   # (B,1,Lt)
    action_mask = get_mask_via_len(ar_len, ACTION_NUM)                   # (B,1,La)

    src_hidden = jnp.concatenate([context_hidden, tp_hidden, action_hidden], axis=1)
    src_mask = jnp.concatenate([context_mask, tp_mask, action_mask], axis=2)

    dec_out = decoder_standin(resp_gth, src_hidden, src_mask,
                              params["E_tok"], params["W_dec"])          # (B, L_r, H)

    # copy indices into global vocab: [context | loc2glo[tp] | loc2glo[ar]]
    transfer_tp = params["loc2glo"][tp_path]
    transfer_ar = params["loc2glo"][ar]
    copy_idx = jnp.concatenate([context, transfer_tp, transfer_ar], axis=1)  # (B, L_s)

    probs_pad = response_proj(dec_out, src_hidden, src_mask, copy_idx,
                              params["W_gen_pad"], params["b_gen_pad"])
    return probs_pad, dec_out, src_hidden, src_mask


def proj_reference(dec_out, src_hidden, src_mask, context, tp, ar, params):
    # literal translation of Response.proj for verification
    gen_logit = dec_out @ params["W_gen"] + params["b_gen"][0]
    copy_logit = jnp.einsum("blh,bsh->bls", dec_out, src_hidden)
    copy_logit = jnp.where(src_mask == 0.0, -1e9, copy_logit)
    logits = jnp.concatenate([gen_logit, copy_logit], axis=-1)
    if SCALE_PRJ:
        logits = logits * H ** (-0.5)
    probs = jax.nn.softmax(logits, axis=-1)
    gen_prob = probs[..., :V]
    cc = probs[..., V:V + CONTEXT_MAX_LEN]
    ct = probs[..., V + CONTEXT_MAX_LEN:V + CONTEXT_MAX_LEN + STATE_NUM]
    ca = probs[..., V + CONTEXT_MAX_LEN + STATE_NUM:]
    copy_context = jnp.einsum("bls,bsv->blv", cc, jax.nn.one_hot(context, V))
    copy_tp = jnp.einsum("bls,bsv->blv", ct, jax.nn.one_hot(params["loc2glo"][tp], V))
    copy_ar = jnp.einsum("bls,bsv->blv", ca, jax.nn.one_hot(params["loc2glo"][ar], V))
    return gen_prob + copy_context + copy_tp + copy_ar


# ----------------------------------- main -------------------------------------
if __name__ == "__main__":
    key = jax.random.PRNGKey(0)
    ks = jax.random.split(key, 12)

    params = {
        "W_gen": 0.05 * jax.random.normal(ks[0], (H, V), jnp.float32),
        "b_gen": jnp.zeros((1, V), jnp.float32),
        "E_tok": 0.1 * jax.random.normal(ks[1], (V, H), jnp.float32),
        "W_enc": 0.1 * jax.random.normal(ks[2], (H, H), jnp.float32),
        "W_dec": 0.1 * jax.random.normal(ks[3], (H, H), jnp.float32),
        # deterministic local->global vocab map (shape (n_topic,))
        "loc2glo": (jnp.arange(N_TOPIC, dtype=jnp.int32) * 3 + 5) % V,
    }
    # pad/scale the projection params ONCE (not per call)
    params["W_gen_pad"], params["b_gen_pad"] = prepare_proj_params(
        params["W_gen"], params["b_gen"])

    context = jax.random.randint(ks[4], (B, CONTEXT_MAX_LEN), 0, V, jnp.int32)
    context_len = jnp.array([12, CONTEXT_MAX_LEN], jnp.int32)
    tp_path = jax.random.randint(ks[5], (B, STATE_NUM), 0, N_TOPIC, jnp.int32)
    tp_path_len = jnp.array([5, 8], jnp.int32)
    ar = jax.random.randint(ks[6], (B, ACTION_NUM), 0, N_TOPIC, jnp.int32)
    ar_len = jnp.array([3, 6], jnp.int32)
    tp_hidden = 0.1 * jax.random.normal(ks[7], (B, STATE_NUM, H), jnp.float32)
    action_hidden = 0.1 * jax.random.normal(ks[8], (B, ACTION_NUM, H), jnp.float32)
    resp_gth = jax.random.randint(ks[9], (B, R_MAX_LEN), 0, V, jnp.int32)
    resp_gth_len = jnp.array([R_MAX_LEN, R_MAX_LEN], jnp.int32)

    probs_pad, dec_out, src_hidden, src_mask = response_forward(
        params, ar, ar_len, context, context_len, tp_path, tp_path_len,
        tp_hidden, action_hidden, resp_gth, resp_gth_len)
    probs_pad = jax.block_until_ready(probs_pad)

    # consumer-side narrow view (pad columns are exactly 0)
    probs = probs_pad[:, :, :V]
    ref = proj_reference(dec_out, src_hidden, src_mask, context, tp_path, ar, params)
    assert probs.shape == (B, R_MAX_LEN, V)
    # tolerance relaxed vs f32 reference due to approx reciprocal in the kernel
    assert jnp.allclose(probs, ref, rtol=2e-3, atol=2e-3), "mismatch vs reference"
    assert jnp.allclose(probs_pad[:, :, V:], 0.0), "pad columns must be exactly 0"

    print("KERNEL_OK")
</pallas_src>

<mosaic_0001>
module attributes {stable_mosaic.version = 11 : i64} {
  func.func @_proj_kernel(%arg0: memref<2x8x32xf32, #tpu.memory_space<vmem>>, %arg1: memref<2x32x32xf32, #tpu.memory_space<vmem>>, %arg2: memref<2x1x32xf32, #tpu.memory_space<vmem>>, %arg3: memref<2x32x1xi32, #tpu.memory_space<vmem>>, %arg4: memref<32x128xf32, #tpu.memory_space<vmem>>, %arg5: memref<1x128xf32, #tpu.memory_space<vmem>>, %arg6: memref<2x8x128xf32, #tpu.memory_space<vmem>>) attributes {dimension_semantics = [], scalar_prefetch = 0 : i64, scratch_operands = 0 : i64, tpu.core_type = #tpu.core_type<tc>} {
    %c0 = arith.constant 0 : index
    %c0_0 = arith.constant 0 : index
    %c0_1 = arith.constant 0 : index
    %0 = vector.load %arg0[%c0, %c0_0, %c0_1] : memref<2x8x32xf32, #tpu.memory_space<vmem>>, vector<2x8x32xf32>
    %cst = arith.constant 0.176776692 : f32
    %1 = vector.broadcast %cst : f32 to vector<2x8x32xf32>
    %2 = arith.mulf %0, %1 : vector<2x8x32xf32>
    %c0_2 = arith.constant 0 : index
    %c0_3 = arith.constant 0 : index
    %c0_4 = arith.constant 0 : index
    %3 = vector.load %arg1[%c0_2, %c0_3, %c0_4] : memref<2x32x32xf32, #tpu.memory_space<vmem>>, vector<2x32x32xf32>
    %4 = vector.shape_cast %2 : vector<2x8x32xf32> to vector<16x32xf32>
    %c0_5 = arith.constant 0 : index
    %c0_6 = arith.constant 0 : index
    %5 = vector.load %arg4[%c0_5, %c0_6] : memref<32x128xf32, #tpu.memory_space<vmem>>, vector<32x128xf32>
    %cst_7 = arith.constant dense<0.000000e+00> : vector<16x128xf32>
    %6 = tpu.matmul %4, %5, %cst_7 {dimension_numbers = #tpu.dot_dimension_numbers<[1], [0], [0], [1], [0, 0, 1, 1], [], []>} : vector<16x32xf32>, vector<32x128xf32>, vector<16x128xf32> -> vector<16x128xf32>
    %7 = vector.shape_cast %6 : vector<16x128xf32> to vector<2x8x128xf32>
    %c0_8 = arith.constant 0 : index
    %c0_9 = arith.constant 0 : index
    %8 = vector.load %arg5[%c0_8, %c0_9] : memref<1x128xf32, #tpu.memory_space<vmem>>, vector<1x128xf32>
    %9 = vector.shape_cast %8 : vector<1x128xf32> to vector<1x1x128xf32>
    %10 = vector.broadcast %9 : vector<1x1x128xf32> to vector<2x8x128xf32>
    %11 = arith.addf %7, %10 : vector<2x8x128xf32>
    "tpu.trace_start"() <{level = 10 : i32, message = "blh,bsh->bls"}> : () -> ()
    %cst_10 = arith.constant dense<0.000000e+00> : vector<2x8x32xf32>
    %12 = tpu.matmul %2, %3, %cst_10 {dimension_numbers = #tpu.dot_dimension_numbers<[2], [2], [1], [1], [0, 0, 0, 1, 1, 1], [0], [0]>} : vector<2x8x32xf32>, vector<2x32x32xf32>, vector<2x8x32xf32> -> vector<2x8x32xf32>
    "tpu.trace_stop"() : () -> ()
    %c0_11 = arith.constant 0 : index
    %c0_12 = arith.constant 0 : index
    %c0_13 = arith.constant 0 : index
    %13 = vector.load %arg2[%c0_11, %c0_12, %c0_13] : memref<2x1x32xf32, #tpu.memory_space<vmem>>, vector<2x1x32xf32>
    %14 = vector.broadcast %13 : vector<2x1x32xf32> to vector<2x8x32xf32>
    %15 = arith.addf %12, %14 : vector<2x8x32xf32>
    %cst_14 = arith.constant dense<0xFF800000> : vector<2x8xf32>
    %16 = vector.multi_reduction <maximumf>, %11, %cst_14 [2] : vector<2x8x128xf32> to vector<2x8xf32>
    %17 = vector.shape_cast %16 : vector<2x8xf32> to vector<2x8x1xf32>
    %cst_15 = arith.constant dense<0xFF800000> : vector<2x8xf32>
    %18 = vector.multi_reduction <maximumf>, %15, %cst_15 [2] : vector<2x8x32xf32> to vector<2x8xf32>
    %19 = vector.shape_cast %18 : vector<2x8xf32> to vector<2x8x1xf32>
    %20 = arith.maximumf %17, %19 : vector<2x8x1xf32>
    %21 = vector.broadcast %20 : vector<2x8x1xf32> to vector<2x8x128xf32>
    %22 = arith.subf %11, %21 : vector<2x8x128xf32>
    %23 = math.exp %22 : vector<2x8x128xf32>
    %24 = vector.broadcast %20 : vector<2x8x1xf32> to vector<2x8x32xf32>
    %25 = arith.subf %15, %24 : vector<2x8x32xf32>
    %26 = math.exp %25 : vector<2x8x32xf32>
    %cst_16 = arith.constant dense<0.000000e+00> : vector<2x8xf32>
    %27 = vector.multi_reduction <add>, %23, %cst_16 [2] : vector<2x8x128xf32> to vector<2x8xf32>
    %28 = vector.shape_cast %27 : vector<2x8xf32> to vector<2x8x1xf32>
    %cst_17 = arith.constant dense<0.000000e+00> : vector<2x8xf32>
    %29 = vector.multi_reduction <add>, %26, %cst_17 [2] : vector<2x8x32xf32> to vector<2x8xf32>
    %30 = vector.shape_cast %29 : vector<2x8xf32> to vector<2x8x1xf32>
    %31 = arith.addf %28, %30 : vector<2x8x1xf32>
    %32 = tpu.reciprocal %31 {approx = true} : vector<2x8x1xf32> -> vector<2x8x1xf32>
    %33 = tpu.iota {dimensions = array<i32: 2>} : vector<2x32x128xi32>
    %c0_18 = arith.constant 0 : index
    %c0_19 = arith.constant 0 : index
    %c0_20 = arith.constant 0 : index
    %34 = vector.load %arg3[%c0_18, %c0_19, %c0_20] : memref<2x32x1xi32, #tpu.memory_space<vmem>>, vector<2x32x1xi32>
    %35 = vector.broadcast %34 : vector<2x32x1xi32> to vector<2x32x128xi32>
    %36 = arith.cmpi eq, %33, %35 : vector<2x32x128xi32>
    %37 = arith.extui %36 : vector<2x32x128xi1> to vector<2x32x128xi32>
    %38 = arith.sitofp %37 : vector<2x32x128xi32> to vector<2x32x128xf32>
    %39 = vector.broadcast %32 : vector<2x8x1xf32> to vector<2x8x128xf32>
    %40 = arith.mulf %23, %39 : vector<2x8x128xf32>
    %41 = vector.broadcast %32 : vector<2x8x1xf32> to vector<2x8x32xf32>
    %42 = arith.mulf %26, %41 : vector<2x8x32xf32>
    "tpu.trace_start"() <{level = 10 : i32, message = "bls,bsv->blv"}> : () -> ()
    %cst_21 = arith.constant dense<0.000000e+00> : vector<2x8x128xf32>
    %43 = tpu.matmul %42, %38, %cst_21 {dimension_numbers = #tpu.dot_dimension_numbers<[2], [1], [1], [2], [0, 0, 0, 1, 1, 2], [0], [0]>} : vector<2x8x32xf32>, vector<2x32x128xf32>, vector<2x8x128xf32> -> vector<2x8x128xf32>
    "tpu.trace_stop"() : () -> ()
    %44 = arith.addf %40, %43 : vector<2x8x128xf32>
    %c0_22 = arith.constant 0 : index
    %c0_23 = arith.constant 0 : index
    %c0_24 = arith.constant 0 : index
    %45 = vector.load %arg6[%c0_22, %c0_23, %c0_24] : memref<2x8x128xf32, #tpu.memory_space<vmem>>, vector<2x8x128xf32>
    tpu.vector_store %arg6[%c0_22, %c0_23, %c0_24], %44 {strides = array<i32>} : memref<2x8x128xf32, #tpu.memory_space<vmem>>, vector<2x8x128xf32>,
    return
  }
}

</mosaic_0001>

<bundles_post_ra>
// kernel: tpu_custom_call.1
= control target key start
LH: loop header
LB: loop body
LE: loop exit
PB: predicated region body
PF: predicated region fallthrough
CT: control target
= control target key end

     0   :  { %11 = vsyncpa [#allocation3], 0  ;;  %s969_s0 = inlined_call_operand.hbm [shape: f32[2,8,32], index: 0, kind: input, shape index: {}]   ;;  %s970_s1 = inlined_call_operand.vmem [shape: f32[2,32,32], index: 1, kind: input, shape index: {}]   ;;  %s971_s2 = inlined_call_operand.vmem [shape: f32[2,1,32], index: 2, kind: input, shape index: {}]   ;;  %s972_s3 = inlined_call_operand.vmem [shape: s32[2,32,1], index: 3, kind: input, shape index: {}]   ;;  %s973_s4 = inlined_call_operand.hbm [shape: f32[32,128], index: 4, kind: input, shape index: {}]   ;;  %s974_s5 = inlined_call_operand.vmem [shape: f32[1,128], index: 5, kind: input, shape index: {}]   ;;  %s975_s6 = inlined_call_operand.hbm [shape: f32[2,8,128], index: 6, kind: output, shape index: {}]  }
   0x1   :  { %12 = vsyncpa [#allocation6], 0 }
   0x2   :  { %13 = vsyncpa [#allocation4], 0  ;;  %s808_s21 = smov [#allocation2]  }
   0x3   :  { %s19_s22 = sshll.u32 %s808_s21, 4  ;;  %s20_s22 = int_to_ptr.vmem [resolvable:$true] %s19_s22 }
   0x4   :  { %s750_s23 = scalar_lea.vmem %s20_s22, 256  ;;  %p755_p1 = scmp.lt.s32.totalorder %s20_s22, %s20_s22 }
   0x5   :  { %p751_p0 = scmp.ne.s32.totalorder %s20_s22, %s750_s23  ;;  %p756_p2 = scmp.lt.s32.totalorder %s750_s23, %s750_s23 }
   0x7   :  { %p757_p3 = por %p756_p2, %p755_p1 }
   0x9   :  { %p758_p4 = pnand %p757_p3, %p751_p0 }
   0xb   :  { %761 = shalt.err (!%p758_p4)
}
   0xc   :  { %s809_s24 = smov 128   ;;  %s810_s25 = smov 8  }
   0xd   :  { %25 = dma.hbm_to_vmem [thread:$0]  %s969_s0, 256, %s20_s22, [#allocation3], %s809_s24, %s809_s24, %s810_s25  }
   0xe   :  { %s811_s28 = smov [#allocation5]  }
   0xf   :  { %s37_s29 = sshll.u32 %s811_s28, 4  ;;  %s38_s29 = int_to_ptr.vmem [resolvable:$true] %s37_s29 }
  0x10   :  { %s770_s30 = scalar_lea.vmem %s38_s29, 512  ;;  %p775_p6 = scmp.lt.s32.totalorder %s38_s29, %s38_s29 }
  0x11   :  { %p771_p5 = scmp.ne.s32.totalorder %s38_s29, %s770_s30  ;;  %p776_p7 = scmp.lt.s32.totalorder %s770_s30, %s770_s30 }
  0x13   :  { %p777_p8 = por %p776_p7, %p775_p6 }
  0x15   :  { %p778_p9 = pnand %p777_p8, %p771_p5 }
  0x17   :  { %781 = shalt.err (!%p778_p9)
}
  0x18   :  { %43 = dma.hbm_to_vmem [thread:$0]  %s973_s4, 512, %s38_s29, [#allocation6], %s809_s24, %s809_s24, %s810_s25  }
  0x19   :  { %802 = dma.done.wait [#allocation3], 256  }
  0x1a   :  { %803 = vsyncadd [#allocation3], 4294967040 }
  0x1b   :  { %804 = dma.done.wait [#allocation6], 512  }
  0x1c   :  { %805 = vsyncadd [#allocation6], 4294966784  ;;  %v812_v0 = vmov 0.0   ;;  %vm813_vm0 = vmmov 0   ;;  %vm68_vm1 = vcmask 261120   ;;  %v67_v1 = vld [vmem:[#allocation5 + $0x18] sm:$0xff]  ;;  %v375_v46 = vlaneseq }
  0x1d   :  { %675 = vmatprep.subr.mxu1 %v812_v0  ;;  %683 = vmatprep.mubr.msk.f32.mxu1 %vm813_vm0, %v812_v0  ;;  %v59_v2 = vld [vmem:[%s970_s1 + $0x18] sm:$0xff]  ;;  %v66_v3 = vld [vmem:[#allocation5 + $0x10] sm:$0xff]  ;;  %v58_v5 = vld [vmem:[%s970_s1 + $0x10] sm:$0xff]  ;;  %v814_v17 = vmov 0   ;;  %v815_v56 = vmov 1.0  }
  0x1e   :  { %664 = vmatprep.subr.mxu0 %v67_v1  ;;  %676 = vmatpush3.xpose.msk.msra.mxu1 %vm68_vm1, %v59_v2  ;;  %v65_v4 = vld [vmem:[#allocation5 + $0x8] sm:$0xff]  ;;  %v52_v6 = vld [vmem:[#allocation2] sm:$0xff]  ;;  %v53_v7 = vld [vmem:[#allocation2 + $0x8] sm:$0xff]  ;;  %v376_v50 = vand.u32 127, %v375_v46 }
  0x1f   :  { %665 = vmatpush3.msra.mxu0 %v67_v1  ;;  %677 = vmatprep.subr.mxu1 %v812_v0  ;;  %v54_v8 = vmul.f32 0.17677669, %v52_v6  ;;  %v64_v9 = vld [vmem:[#allocation5] sm:$0xff]  ;;  %v55_v10 = vmul.f32 0.17677669, %v53_v7  ;;  %v57_v11 = vld [vmem:[%s970_s1 + $0x8] sm:$0xff] }
  0x20   :  { %666 = vmatprep.subr.mxu0 %v66_v3  ;;  %v63_v12 = vld [vmem:[%s970_s1 + $0x38] sm:$0xff]  ;;  %v56_v13 = vld [vmem:[%s970_s1] sm:$0xff]  ;;  %v62_v14 = vld [vmem:[%s970_s1 + $0x30] sm:$0xff]  ;;  %729 = vset.pattern.permute.xlu1 %v814_v17 }
  0x21   :  { %667 = vmatpush3.msra.mxu0 %v66_v3  ;;  %672 = vmatprep.mubr.msk.f32.mxu0 %vm68_vm1, %v54_v8  ;;  %v61_v15 = vld [vmem:[%s970_s1 + $0x28] sm:$0xff]  ;;  %v60_v16 = vld [vmem:[%s970_s1 + $0x20] sm:$0xff]  ;;  %v384_v33 = vld [vmem:[%s972_s3 + $0x38] sm:$0xff] }
  0x22   :  { %668 = vmatprep.subr.mxu0 %v65_v4  ;;  %678 = vmatpush3.xpose.msk.msra.mxu1 %vm68_vm1, %v58_v5  ;;  %v607_v19 = vld [vmem:[%s974_s5] ss:$0 sm:$0xff]  ;;  %v609_v28 = vld [vmem:[%s971_s2 + $0x1] ss:$0 sm:$0xff]  ;;  %v379_v34 = vld [vmem:[%s972_s3 + $0x10] sm:$0xff] }
  0x23   :  { %669 = vmatpush3.msra.mxu0 %v65_v4  ;;  %679 = vmatprep.subr.mxu1 %v812_v0  ;;  %v608_v22 = vld [vmem:[%s971_s2] ss:$0 sm:$0xff]  ;;  %v383_v35 = vld [vmem:[%s972_s3 + $0x30] sm:$0xff]  ;;  %v378_v36 = vld [vmem:[%s972_s3 + $0x8] sm:$0xff] }
  0x24   :  { %670 = vmatprep.subr.mxu0 %v64_v9  ;;  %728 = vset.pattern.permute.xlu0 %v814_v17  ;;  %v382_v37 = vld [vmem:[%s972_s3 + $0x28] sm:$0xff]  ;;  %v377_v38 = vld [vmem:[%s972_s3] sm:$0xff]  ;;  %v380_v4 = vld [vmem:[%s972_s3 + $0x18] sm:$0xff] }
  0x25   :  { %671 = vmatpush3.msra.mxu0 %v64_v9  ;;  %v381_v5 = vld [vmem:[%s972_s3 + $0x20] sm:$0xff]  ;;  %s816_s3 = smov [#allocation7]  }
  0x26   :  { %673 = vmatmul.mubr.msk.f32.vlgmr.msra.gmra.mxu0 %vm68_vm1, %v55_v10  ;;  %680 = vmatpush3.xpose.msk.msra.mxu1 %vm68_vm1, %v57_v11  ;;  %s592_s18 = sshll.u32 %s816_s3, 4  ;;  %s593_s18 = int_to_ptr.vmem [resolvable:$true] %s592_s18 }
  0x27   :  { %686 = vmatprep.subr.mxu0 %v812_v0  ;;  %681 = vmatprep.subr.mxu1 %v812_v0  ;;  %s782_s19 = scalar_lea.vmem %s593_s18, 256  ;;  %p787_p11 = scmp.lt.s32.totalorder %s593_s18, %s593_s18 }
  0x28   :  { %687 = vmatpush3.xpose.msk.msra.mxu0 %vm68_vm1, %v63_v12  ;;  %694 = vmatprep.mubr.msk.f32.mxu0 %vm813_vm0, %v812_v0  ;;  %p783_p10 = scmp.ne.s32.totalorder %s593_s18, %s782_s19  ;;  %p788_p12 = scmp.lt.s32.totalorder %s782_s19, %s782_s19 }
  0x29   :  { %688 = vmatprep.subr.mxu0 %v812_v0 }
  0x2a   :  { %682 = vmatpush3.xpose.msk.msra.mxu1 %vm68_vm1, %v56_v13  ;;  %p789_p13 = por %p788_p12, %p787_p11 }
  0x2b   :  { %697 = vmatprep.subr.mxu1 %v812_v0 }
  0x2c   :  { %689 = vmatpush3.xpose.msk.msra.mxu0 %vm68_vm1, %v62_v14  ;;  %p790_p0 = pnand %p789_p13, %p783_p10 }
  0x2d   :  { %684 = vmatmul.mubr.msk.f32.vlgmr.msra.gmra.mxu1 %vm68_vm1, %v54_v8  ;;  %690 = vmatprep.subr.mxu0 %v812_v0 }
  0x2e   :  { %705 = vmatprep.mubr.msk.f32.mxu1 %vm813_vm0, %v812_v0 }
  0x30   :  { %691 = vmatpush3.xpose.msk.msra.mxu0 %vm68_vm1, %v61_v15 }
  0x31   :  { %692 = vmatprep.subr.mxu0 %v812_v0 }
  0x34   :  { %693 = vmatpush3.xpose.msk.msra.mxu0 %vm68_vm1, %v60_v16 }
  0x35   :  { %708 = vmatprep.subr.mxu0 %v812_v0 }
  0x37   :  { %695 = vmatmul.mubr.msk.f32.vlgmr.msra.gmra.mxu0 %vm68_vm1, %v55_v10 }
  0x38   :  { %716 = vmatprep.mubr.msk.f32.mxu0 %vm813_vm0, %v812_v0 }
  0xe6   :  { %v674_v18 = vpop.f32.mrf.mxu0 }
  0xe7   :  { %v158_v23 = vadd.f32 %v674_v18, %v607_v19 }
  0xe8   :  { %v141_v20 = vpop.f32.mrf.mxu0 }
  0xe9   :  { %v157_v21 = vadd.f32 %v607_v19, %v141_v20 }
  0xeb   :  { %337 = vmax.xlane.f32.xlu0 %v157_v21 }
  0xed   :  { %v251_v24 = vpop.f32.mrf.mxu1 }
  0xee   :  { %v252_v25 = vadd.f32 %v608_v22, %v251_v24 }
  0xef   :  { %339 = vmax.xlane.f32.xlu0 %v158_v23  ;;  %v685_v26 = vpop.f32.mrf.mxu1 }
  0xf0   :  { %v341_v27 = vsel %vm68_vm1, %v252_v25, -inf }
  0xf1   :  { %342 = vmax.xlane.f32.xlu1 %v341_v27 }
  0xf7   :  { %v333_v29 = vpop.f32.mrf.mxu0 }
  0xf8   :  { %v334_v30 = vadd.f32 %v609_v28, %v333_v29 }
  0xf9   :  { %v696_v31 = vpop.f32.mrf.mxu0 }
  0xfa   :  { %v344_v32 = vsel %vm68_vm1, %v334_v30, -inf }
  0xfb   :  { %345 = vmax.xlane.f32.xlu1 %v344_v32 }
 0x10c   :  { %407 = vperm.xlu1 %729, %v384_v33  }
 0x110   :  { %392 = vperm.xlu1 %729, %v379_v34  }
 0x114   :  { %404 = vperm.xlu1 %729, %v383_v35  }
 0x118   :  { %389 = vperm.xlu1 %729, %v378_v36  }
 0x11c   :  { %401 = vperm.xlu1 %729, %v382_v37  }
 0x120   :  { %386 = vperm.xlu1 %729, %v377_v38  }
 0x174   :  { %v338_v39 = vpop.xlane.xlu0 %337 }
 0x178   :  { %v340_v47 = vpop.xlane.xlu0 %339 }
 0x17a   :  { %v343_v40 = vpop.xlane.xlu1 %342 }
 0x17b   :  { %v347_v41 = vmax.f32 %v338_v39, %v343_v40 }
 0x17d   :  { %v349_v42 = vsub.f32 %v157_v21, %v347_v41  ;;  %v355_v43 = vsub.f32 %v252_v25, %v347_v41 }
 0x17f   :  { %v351_v44 = vmul.f32 1.442695, %v349_v42  ;;  %v357_v45 = vmul.f32 1.442695, %v355_v43 }
 0x181   :  { %730 = vpow2.f32 %v351_v44 }
 0x182   :  { %732 = vpow2.f32 %v357_v45 }
 0x184   :  { %v346_v48 = vpop.xlane.xlu1 %345 }
 0x185   :  { %v348_v49 = vmax.f32 %v340_v47, %v346_v48 }
 0x187   :  { %v350_v51 = vsub.f32 %v158_v23, %v348_v49  ;;  %v356_v52 = vsub.f32 %v334_v30, %v348_v49 }
 0x188   :  { %v408_v53 = vpop.permute.xlu1 %407 }
 0x189   :  { %v353_v54 = vmul.f32 1.442695, %v350_v51  ;;  %v359_v55 = vmul.f32 1.442695, %v356_v52  ;;  %vm416_vm2 = vcmp.eq.s32.totalorder %v376_v50, %v408_v53 }
 0x18a   :  { %709 = vmatpush3.msk.msra.mxu0 %vm416_vm2, %v815_v56 }
 0x18b   :  { %734 = vpow2.f32 %v353_v54  ;;  %710 = vmatprep.subr.mxu0 %v812_v0 }
 0x18c   :  { %736 = vpow2.f32 %v359_v55  ;;  %v393_v57 = vpop.permute.xlu1 %392 }
 0x18d   :  { %vm411_vm6 = vcmp.eq.s32.totalorder %v376_v50, %v393_v57 }
 0x18e   :  { %v731_v58 = vpop.eup %730 }
 0x18f   :  { %v733_v59 = vpop.eup %732  ;;  %361 = vadd.xlane.f32.xlu0 %v731_v58 }
 0x190   :  { %v405_v60 = vpop.permute.xlu1 %404  ;;  %v365_v61 = vsel %vm68_vm1, %v733_v59, 0.0 }
 0x191   :  { %vm415_vm3 = vcmp.eq.s32.totalorder %v376_v50, %v405_v60 }
 0x192   :  { %711 = vmatpush3.msk.msra.mxu0 %vm415_vm3, %v815_v56 }
 0x193   :  { %366 = vadd.xlane.f32.xlu0 %v365_v61  ;;  %712 = vmatprep.subr.mxu0 %v812_v0 }
 0x194   :  { %v390_v62 = vpop.permute.xlu1 %389 }
 0x195   :  { %vm410_vm7 = vcmp.eq.s32.totalorder %v376_v50, %v390_v62 }
 0x198   :  { %v735_v63 = vpop.eup %734  ;;  %v402_v1 = vpop.permute.xlu1 %401 }
 0x199   :  { %v737_v2 = vpop.eup %736  ;;  %363 = vadd.xlane.f32.xlu1 %v735_v63  ;;  %vm414_vm4 = vcmp.eq.s32.totalorder %v376_v50, %v402_v1 }
 0x19a   :  { %713 = vmatpush3.msk.msra.mxu0 %vm414_vm4, %v815_v56  ;;  %v368_v3 = vsel %vm68_vm1, %v737_v2, 0.0 }
 0x19b   :  { %714 = vmatprep.subr.mxu0 %v812_v0 }
 0x19c   :  { %v387_v9 = vpop.permute.xlu1 %386 }
 0x19d   :  { %369 = vadd.xlane.f32.xlu1 %v368_v3  ;;  %vm409_vm8 = vcmp.eq.s32.totalorder %v376_v50, %v387_v9 }
 0x1a9   :  { %395 = vperm.xlu0 %728, %v380_v4  }
 0x1ae   :  { %398 = vperm.xlu1 %729, %v381_v5  }
 0x218   :  { %v362_v6 = vpop.xlane.xlu0 %361 }
 0x21c   :  { %v367_v7 = vpop.xlane.xlu0 %366 }
 0x21d   :  { %v371_v8 = vadd.f32 %v367_v7, %v362_v6 }
 0x21f   :  { %738 = vrcp.f32 %v371_v8 }
 0x222   :  { %v364_v10 = vpop.xlane.xlu1 %363 }
 0x224   :  { %v396_v11 = vpop.permute.xlu0 %395 }
 0x225   :  { %vm412_vm5 = vcmp.eq.s32.totalorder %v376_v50, %v396_v11 }
 0x226   :  { %v370_v12 = vpop.xlane.xlu1 %369  ;;  %698 = vmatpush3.msk.msra.mxu1 %vm412_vm5, %v815_v56 }
 0x227   :  { %v372_v13 = vadd.f32 %v370_v12, %v364_v10  ;;  %699 = vmatprep.subr.mxu1 %v812_v0 }
 0x228   :  { %700 = vmatpush3.msk.msra.mxu1 %vm411_vm6, %v815_v56 }
 0x229   :  { %740 = vrcp.f32 %v372_v13  ;;  %701 = vmatprep.subr.mxu1 %v812_v0 }
 0x22a   :  { %v399_v14 = vpop.permute.xlu1 %398  ;;  %702 = vmatpush3.msk.msra.mxu1 %vm410_vm7, %v815_v56 }
 0x22b   :  { %vm413_vm9 = vcmp.eq.s32.totalorder %v376_v50, %v399_v14  ;;  %703 = vmatprep.subr.mxu1 %v812_v0 }
 0x22c   :  { %v739_v15 = vpop.eup %738  ;;  %715 = vmatpush3.msk.msra.mxu0 %vm413_vm9, %v815_v56  ;;  %704 = vmatpush3.msk.msra.mxu1 %vm409_vm8, %v815_v56 }
 0x22d   :  { %v435_v16 = vmul.f32 %v739_v15, %v733_v59  ;;  %v433_v19 = vmul.f32 %v739_v15, %v731_v58 }
 0x22f   :  { %706 = vmatmul.mubr.msk.f32.vlgmr.msra.gmra.mxu1 %vm68_vm1, %v435_v16 }
 0x236   :  { %v741_v17 = vpop.eup %740 }
 0x237   :  { %v436_v18 = vmul.f32 %v741_v17, %v737_v2  ;;  %v434_v23 = vmul.f32 %v741_v17, %v735_v63 }
 0x239   :  { %717 = vmatmul.mubr.msk.f32.vlgmr.msra.gmra.mxu0 %vm68_vm1, %v436_v18 }
 0x2ef   :  { %v506_v20 = vpop.f32.mrf.mxu1 }
 0x2f0   :  { %v583_v21 = vadd.f32 %v506_v20, %v433_v19 }
 0x2f1   :  { %v707_v22 = vpop.f32.mrf.mxu1 }
 0x2f2   :  { %585 = vst [vmem:[#allocation7] sm:$0xff] %v583_v21 }
 0x2f9   :  { %v579_v24 = vpop.f32.mrf.mxu0 }
 0x2fa   :  { %v584_v0 = vadd.f32 %v579_v24, %v434_v23 }
 0x2fb   :  { %v718_v25 = vpop.f32.mrf.mxu0 }
 0x2fc   :  { %586 = vst [vmem:[#allocation7 + $0x8] sm:$0xff] %v584_v0 }
 0x2fd   :  { %793 = shalt.err (!%p790_p0)
}
 0x2fe   :  { %598 = dma.vmem_to_hbm [thread:$0]  %s593_s18, 256, %s975_s6, [#allocation4], %s809_s24, %s809_s24, %s810_s25  }
 0x2ff   :  { %806 = dma.done.wait [#allocation4], 256  }
 0x300   :  { %807 = vsyncadd [#allocation4], 4294967040 }
 0x301   :  { %602 = vsyncpa [#allocation3], 1 }
 0x302   :  { %603 = vsyncpa [#allocation6], 1 }
 0x303   :  { %604 = vsyncpa [#allocation4], 1 }

</bundles_post_ra>
